<compile_context>
chip_gen: v6e
topology: v6e:2x2x1
jax: 0.10.0
libtpu: 0.0.40
codegen_flags: <defaults>
</compile_context>

<pallas_src>
import jax
import jax.numpy as jnp
from jax.experimental import pallas as pl
from jax.experimental.pallas import tpu as pltpu


_LANES = 512                          # lane-dense slab width (multiple of 128)
_TARGET_TILE_BYTES = 4 * 1024 * 1024  # ~4 MiB per buffer per grid step
_MIN_GRID_STEPS = 4                   # keep DMA pipeline & v7x 2-TC sharding fed
_VMEM_LIMIT_BYTES = 48 * 1024 * 1024  # > v5e 16 MiB default, < v7x 64 MiB physical


def _cdiv(a, b):
    return -(-a // b)


def _round_up(a, b):
    return ((a + b - 1) // b) * b


def _hsigmoid_kernel(x_ref, o_ref):
    """Elementwise hot path: relu6(x + 3) / 6 on one (tile_rows, _LANES) block."""
    x = x_ref[...].astype(jnp.float32)
    y = jnp.clip(x + 3.0, 0.0, 6.0) / 6.0
    o_ref[...] = y.astype(o_ref.dtype)


def hsigmoid(x):
    """Functional equivalent of PyTorch Hsigmoid.forward (any shape / float dtype)."""
    orig_shape = x.shape
    dtype = x.dtype
    n = int(x.size)
    if n == 0:
        return x

    itemsize = jnp.dtype(dtype).itemsize
    # dtype-aware sublane packing: 8 rows for 32-bit, 16 for 16-bit, 32 for 8-bit.
    sub = max(8, 32 // itemsize)
    # Constant ~4 MiB byte budget per grid step across dtypes.
    max_tile_rows = max(sub, (_TARGET_TILE_BYTES // (_LANES * itemsize) // sub) * sub)

    flat = x.reshape(-1)
    rows = _cdiv(n, _LANES)
    n_padded = rows * _LANES
    padded = n_padded != n
    if padded:
        # Pad only up to the next 512-wide row; ragged last grid blocks are
        # handled by Pallas' edge masking, no rounding up to tile_rows.
        flat = jnp.pad(flat, (0, n_padded - n))
    x2 = flat.reshape(rows, _LANES)

    # Tile height: aim for >= _MIN_GRID_STEPS grid steps, capped at the 4 MiB
    # budget, rounded to the dtype's sublane packing multiple.
    tile_rows = max(sub, min(max_tile_rows, _round_up(_cdiv(rows, _MIN_GRID_STEPS), sub)))
    if tile_rows > rows:
        tile_rows = rows  # block == full array dim 0 (allowed even if not a multiple of `sub`)
    grid = (_cdiv(rows, tile_rows),)

    cost = pl.CostEstimate(
        flops=4 * n,                      # add, min, max, div
        transcendentals=0,
        bytes_accessed=2 * n * itemsize,  # one read + one write of the array
    )

    out = pl.pallas_call(
        _hsigmoid_kernel,
        out_shape=jax.ShapeDtypeStruct((rows, _LANES), dtype),
        grid=grid,
        in_specs=[pl.BlockSpec((tile_rows, _LANES), lambda i: (i, 0))],
        out_specs=pl.BlockSpec((tile_rows, _LANES), lambda i: (i, 0)),
        compiler_params=pltpu.CompilerParams(
            dimension_semantics=("parallel",),  # shards the 1-D grid across v7x's 2 TCs
            vmem_limit_bytes=_VMEM_LIMIT_BYTES,
        ),
        cost_estimate=cost,
    )(x2)

    if padded:
        return out.reshape(-1)[:n].reshape(orig_shape)
    return out.reshape(orig_shape)


class Hsigmoid:
    """Mirrors the nn.Module API: forward(x) = relu6(x + 3) / 6."""

    def __init__(self, inplace=False):
        # TODO(synk): `inplace` has no meaning in functional JAX; kept for API parity only
        # (input_output_aliases could emulate it but risks clobbering caller-owned buffers).
        self.inplace = inplace

    def __call__(self, x):
        return hsigmoid(x)


if __name__ == "__main__":
    key = jax.random.PRNGKey(0)
    k1, k2, k3, k4 = jax.random.split(key, 4)

    mod = Hsigmoid()

    def _ref_f32(x):
        return jnp.clip(x + 3.0, 0.0, 6.0) / 6.0

    # --- main test: NCHW activation, values spanning both clip bounds ---
    x = jax.random.normal(k1, (2, 4, 16, 16), dtype=jnp.float32) * 4.0
    y = jax.block_until_ready(mod(x))
    assert y.shape == x.shape and y.dtype == x.dtype
    assert jnp.allclose(y, _ref_f32(x), atol=1e-6), "mismatch vs reference (main)"

    # --- ragged test: element count not a multiple of 512 (exercises pad path) ---
    x_odd = jax.random.normal(k2, (3, 5, 7, 9), dtype=jnp.float32) * 4.0
    y_odd = jax.block_until_ready(mod(x_odd))
    assert y_odd.shape == x_odd.shape and y_odd.dtype == x_odd.dtype
    assert jnp.allclose(y_odd, _ref_f32(x_odd), atol=1e-6), "mismatch vs reference (ragged)"

    # --- multi-step grid with a ragged last block (rows not multiple of tile_rows) ---
    x_big = jax.random.normal(k3, (2, 3, 56, 56), dtype=jnp.float32) * 4.0
    y_big = jax.block_until_ready(mod(x_big))
    assert y_big.shape == x_big.shape and y_big.dtype == x_big.dtype
    assert jnp.allclose(y_big, _ref_f32(x_big), atol=1e-6), "mismatch vs reference (multi-block)"

    # --- bf16 test (exercises dtype-aware sublane rounding) ---
    x_bf = (jax.random.normal(k4, (2, 4, 16, 16), dtype=jnp.float32) * 4.0).astype(jnp.bfloat16)
    y_bf = jax.block_until_ready(mod(x_bf))
    y_bf_ref = _ref_f32(x_bf.astype(jnp.float32)).astype(jnp.bfloat16)
    assert y_bf.shape == x_bf.shape and y_bf.dtype == x_bf.dtype
    assert jnp.allclose(y_bf.astype(jnp.float32), y_bf_ref.astype(jnp.float32), atol=1e-2), \
        "mismatch vs reference (bf16)"

    print("KERNEL_OK")
</pallas_src>

<mosaic_0001>
module attributes {stable_mosaic.version = 11 : i64} {
  func.func @_hsigmoid_kernel(%arg0: i32, %arg1: memref<4x512xf32, #tpu.memory_space<vmem>>, %arg2: memref<4x512xf32, #tpu.memory_space<vmem>>) attributes {dimension_semantics = [#tpu.dimension_semantics<parallel>], iteration_bounds = array<i64: 1>, scalar_prefetch = 0 : i64, scratch_operands = 0 : i64, tpu.core_type = #tpu.core_type<tc>, window_params = [{transform_indices = @transform_0, window_bounds = array<i64: 4, 512>}, {transform_indices = @transform_1, window_bounds = array<i64: 4, 512>}]} {
    %c0 = arith.constant 0 : index
    %c0_0 = arith.constant 0 : index
    %0 = vector.load %arg1[%c0, %c0_0] : memref<4x512xf32, #tpu.memory_space<vmem>>, vector<4x512xf32>
    %cst = arith.constant 3.000000e+00 : f32
    %1 = vector.broadcast %cst : f32 to vector<4x512xf32>
    %2 = arith.addf %0, %1 : vector<4x512xf32>
    %cst_1 = arith.constant 0.000000e+00 : f32
    %cst_2 = arith.constant 6.000000e+00 : f32
    %3 = vector.broadcast %cst_1 : f32 to vector<4x512xf32>
    %4 = arith.maximumf %3, %2 : vector<4x512xf32>
    %5 = vector.broadcast %cst_2 : f32 to vector<4x512xf32>
    %6 = arith.minimumf %5, %4 : vector<4x512xf32>
    %cst_3 = arith.constant 6.000000e+00 : f32
    %7 = vector.broadcast %cst_3 : f32 to vector<4x512xf32>
    %8 = arith.divf %6, %7 : vector<4x512xf32>
    %c0_4 = arith.constant 0 : index
    %c0_5 = arith.constant 0 : index
    %9 = vector.load %arg2[%c0_4, %c0_5] : memref<4x512xf32, #tpu.memory_space<vmem>>, vector<4x512xf32>
    tpu.vector_store %arg2[%c0_4, %c0_5], %8 {strides = array<i32>} : memref<4x512xf32, #tpu.memory_space<vmem>>, vector<4x512xf32>,
    return
  }
  func.func @transform_0(%arg0: i32) -> (i32, i32) {
    %c0_i32 = arith.constant 0 : i32
    %c0_i32_0 = arith.constant 0 : i32
    return %arg0, %c0_i32 : i32, i32
  }
  func.func @transform_1(%arg0: i32) -> (i32, i32) {
    %c0_i32 = arith.constant 0 : i32
    %c0_i32_0 = arith.constant 0 : i32
    return %arg0, %c0_i32 : i32, i32
  }
}

</mosaic_0001>

<bundles_post_ra>
// kernel: tpu_custom_call.1
= control target key start
LH: loop header
LB: loop body
LE: loop exit
PB: predicated region body
PF: predicated region fallthrough
CT: control target
= control target key end

     0   :  { %6 = vsyncpa [#allocation3], 0  ;;  %s113_s0 = inlined_call_operand.hbm [shape: f32[4,512], index: 0, kind: input, shape index: {}]   ;;  %s114_s1 = inlined_call_operand.hbm [shape: f32[4,512], index: 1, kind: output, shape index: {}]  }
   0x1   :  { %7 = vsyncpa [#allocation4], 0  ;;  %s95_s6 = smov [#allocation2]  }
   0x2   :  { %s14_s7 = sshll.u32 %s95_s6, 4  ;;  %s15_s7 = int_to_ptr.vmem [resolvable:$true] %s14_s7 }
   0x3   :  { %s59_s8 = scalar_lea.vmem %s15_s7, 256  ;;  %p64_p1 = scmp.lt.s32.totalorder %s15_s7, %s15_s7 }
   0x4   :  { %p60_p0 = scmp.ne.s32.totalorder %s15_s7, %s59_s8  ;;  %p65_p2 = scmp.lt.s32.totalorder %s59_s8, %s59_s8 }
   0x6   :  { %p66_p3 = por %p65_p2, %p64_p1 }
   0x8   :  { %p67_p4 = pnand %p66_p3, %p60_p0 }
   0xa   :  { %70 = shalt.err (!%p67_p4)
}
   0xb   :  { %17 = dma.hbm_to_vmem [thread:$0]  %s113_s0, 256, %s15_s7, [#allocation3]  }
   0xc   :  { %91 = dma.done.wait [#allocation3], 256  }
   0xd   :  { %92 = vsyncadd [#allocation3], 4294967040  ;;  %v21_v0 = vld [vmem:[#allocation2] sm:$0xff]  ;;  %v22_v1 = vld [vmem:[#allocation2 + $0x8] sm:$0xff]  ;;  %s96_s11 = smov [#allocation5]  }
   0xe   :  { %v23_v2 = vadd.f32 3.0, %v21_v0  ;;  %v24_v3 = vadd.f32 3.0, %v22_v1  ;;  %s40_s12 = sshll.u32 %s96_s11, 4  ;;  %s41_s12 = int_to_ptr.vmem [resolvable:$true] %s40_s12 }
   0xf   :  { %s71_s13 = scalar_lea.vmem %s41_s12, 256  ;;  %p76_p6 = scmp.lt.s32.totalorder %s41_s12, %s41_s12 }
  0x10   :  { %v25_v4 = vmax.f32 %v23_v2, 0.0  ;;  %v26_v5 = vmax.f32 %v24_v3, 0.0  ;;  %p72_p5 = scmp.ne.s32.totalorder %s41_s12, %s71_s13  ;;  %p77_p7 = scmp.lt.s32.totalorder %s71_s13, %s71_s13 }
  0x12   :  { %v27_v6 = vmin.f32 %v25_v4, 6.0  ;;  %v28_v7 = vmin.f32 %v26_v5, 6.0  ;;  %p78_p8 = por %p77_p7, %p76_p6 }
  0x14   :  { %v30_v8 = vmul.f32 0.16666667, %v27_v6  ;;  %v31_v9 = vmul.f32 0.16666667, %v28_v7  ;;  %p79_p9 = pnand %p78_p8, %p72_p5 }
  0x16   :  { %32 = vst [vmem:[#allocation5] sm:$0xff] %v30_v8  ;;  %33 = vst [vmem:[#allocation5 + $0x8] sm:$0xff] %v31_v9 }
  0x17   :  { %82 = shalt.err (!%p79_p9)
}
  0x18   :  { %43 = dma.vmem_to_hbm [thread:$0]  %s41_s12, 256, %s114_s1, [#allocation4]  }
  0x19   :  { %93 = dma.done.wait [#allocation4], 256  }
  0x1a   :  { %94 = vsyncadd [#allocation4], 4294967040 }
  0x1b   :  { %47 = vsyncpa [#allocation3], 1 }
  0x1c   :  { %48 = vsyncpa [#allocation4], 1 }

</bundles_post_ra>
